<compile_context>
chip_gen: v5e
topology: v5e:2x2
jax: 0.10.0
libtpu: 0.0.40
codegen_flags: <defaults>
</compile_context>

<pallas_src>
import jax
import jax.numpy as jnp
from jax.experimental import pallas as pl
from jax.experimental.pallas import tpu as pltpu

EPS = 1e-5
D_RAW = 5 * 10 * 10          # 500 features normalized per batch element
D_PAD = 512                  # lane-dense padded feature width (multiple of 128)
TILE_N_MAX = 512             # rows per grid step (multiple of 8; ~6 MB VMEM w/ dbl-buf)


def _round_up(x, m):
    return ((x + m - 1) // m) * m


def _layernorm_kernel(x_ref, w_ref, b_ref, o_ref):
    # x_ref: (TILE_N, D_PAD) f32, pad lanes are zero.
    # w_ref/b_ref: (1, D_PAD) f32, grid-invariant (index_map (0,0) -> resident).
    x = x_ref[...]
    inv_d = 1.0 / float(D_RAW)                       # constant-folded
    s1 = jnp.sum(x, axis=-1, keepdims=True)          # independent reductions:
    s2 = jnp.sum(x * x, axis=-1, keepdims=True)      # no serial XLU dependency
    mean = s1 * inv_d
    var = s2 * inv_d - mean * mean                   # biased variance (torch default)
    inv_std = jax.lax.rsqrt(var + EPS)
    # Pad lanes: x==0, w==0, b==0 -> output pad lanes are 0/bias; sliced off by wrapper.
    o_ref[...] = (x - mean) * inv_std * w_ref[...] + b_ref[...]


def layernorm_5_10_10(x, weight, bias):
    """x: (N, 5, 10, 10) f32; weight, bias: (5, 10, 10) f32."""
    n = x.shape[0]
    x2 = x.reshape(n, D_RAW)
    w2 = weight.reshape(1, D_RAW)
    b2 = bias.reshape(1, D_RAW)

    # Row tile: multiple of 8 sublanes, capped so 2 bufs x (in + out) + params
    # stay far below the 32 MiB scoped VMEM default (and v7x's 64 MiB physical).
    tile_n = min(TILE_N_MAX, max(8, _round_up(n, 8)))
    n_pad = _round_up(n, tile_n)

    # Zero-pad: feature dim 500 -> 512 (lane-dense), batch dim n -> n_pad.
    x_p = jnp.zeros((n_pad, D_PAD), x.dtype).at[:n, :D_RAW].set(x2)
    w_p = jnp.zeros((1, D_PAD), weight.dtype).at[:, :D_RAW].set(w2)
    b_p = jnp.zeros((1, D_PAD), bias.dtype).at[:, :D_RAW].set(b2)

    out = pl.pallas_call(
        _layernorm_kernel,
        out_shape=jax.ShapeDtypeStruct((n_pad, D_PAD), x.dtype),
        grid_spec=pltpu.PrefetchScalarGridSpec(
            num_scalar_prefetch=0,
            grid=(n_pad // tile_n,),
            in_specs=[
                pl.BlockSpec((tile_n, D_PAD), lambda i: (i, 0)),
                pl.BlockSpec((1, D_PAD), lambda i: (0, 0)),   # weight: resident
                pl.BlockSpec((1, D_PAD), lambda i: (0, 0)),   # bias: resident
            ],
            out_specs=pl.BlockSpec((tile_n, D_PAD), lambda i: (i, 0)),
        ),
        compiler_params=pltpu.CompilerParams(
            dimension_semantics=("parallel",),                # shards rows across TCs on v7x
        ),
    )(x_p, w_p, b_p)

    return out[:n, :D_RAW].reshape(n, 5, 10, 10)


def _reference(x, weight, bias):
    mean = jnp.mean(x, axis=(1, 2, 3), keepdims=True)
    var = jnp.mean((x - mean) ** 2, axis=(1, 2, 3), keepdims=True)
    return (x - mean) / jnp.sqrt(var + EPS) * weight[None] + bias[None]


if __name__ == "__main__":
    key = jax.random.PRNGKey(0)
    (kx,) = jax.random.split(key, 1)
    batch = 2
    x = jax.random.normal(kx, (batch, 5, 10, 10), dtype=jnp.float32)

    # torch.nn.LayerNorm defaults: weight = ones, bias = zeros.
    weight = jnp.ones((5, 10, 10), dtype=jnp.float32)
    bias = jnp.zeros((5, 10, 10), dtype=jnp.float32)

    y = layernorm_5_10_10(x, weight, bias)
    jax.block_until_ready(y)

    y_ref = _reference(x, weight, bias)
    assert y.shape == (batch, 5, 10, 10)
    assert jnp.max(jnp.abs(y - y_ref)) < 1e-4

    print("KERNEL_OK")
</pallas_src>

<mosaic_0001>
module attributes {stable_mosaic.version = 11 : i64} {
  func.func @_layernorm_kernel(%arg0: i32, %arg1: memref<8x512xf32, #tpu.memory_space<vmem>>, %arg2: memref<1x512xf32, #tpu.memory_space<vmem>>, %arg3: memref<1x512xf32, #tpu.memory_space<vmem>>, %arg4: memref<8x512xf32, #tpu.memory_space<vmem>>) attributes {dimension_semantics = [#tpu.dimension_semantics<parallel>], iteration_bounds = array<i64: 1>, scalar_prefetch = 0 : i64, scratch_operands = 0 : i64, tpu.core_type = #tpu.core_type<tc>, window_params = [{transform_indices = @transform_0, window_bounds = array<i64: 8, 512>}, {pipeline_mode = #tpu.pipeline_mode<synchronous>, transform_indices = @transform_1, window_bounds = array<i64: 1, 512>}, {pipeline_mode = #tpu.pipeline_mode<synchronous>, transform_indices = @transform_2, window_bounds = array<i64: 1, 512>}, {transform_indices = @transform_3, window_bounds = array<i64: 8, 512>}]} {
    %c0 = arith.constant 0 : index
    %c0_0 = arith.constant 0 : index
    %0 = vector.load %arg1[%c0, %c0_0] : memref<8x512xf32, #tpu.memory_space<vmem>>, vector<8x512xf32>
    %cst = arith.constant dense<0.000000e+00> : vector<8xf32>
    %1 = vector.multi_reduction <add>, %0, %cst [1] : vector<8x512xf32> to vector<8xf32>
    %2 = vector.shape_cast %1 : vector<8xf32> to vector<8x1xf32>
    %3 = arith.mulf %0, %0 : vector<8x512xf32>
    %cst_1 = arith.constant dense<0.000000e+00> : vector<8xf32>
    %4 = vector.multi_reduction <add>, %3, %cst_1 [1] : vector<8x512xf32> to vector<8xf32>
    %5 = vector.shape_cast %4 : vector<8xf32> to vector<8x1xf32>
    %cst_2 = arith.constant 2.000000e-03 : f32
    %6 = vector.broadcast %cst_2 : f32 to vector<8x1xf32>
    %7 = arith.mulf %2, %6 : vector<8x1xf32>
    %cst_3 = arith.constant 2.000000e-03 : f32
    %8 = vector.broadcast %cst_3 : f32 to vector<8x1xf32>
    %9 = arith.mulf %5, %8 : vector<8x1xf32>
    %10 = arith.mulf %7, %7 : vector<8x1xf32>
    %11 = arith.subf %9, %10 : vector<8x1xf32>
    %cst_4 = arith.constant 9.99999974E-6 : f32
    %12 = vector.broadcast %cst_4 : f32 to vector<8x1xf32>
    %13 = arith.addf %11, %12 : vector<8x1xf32>
    %14 = math.rsqrt %13 : vector<8x1xf32>
    %15 = vector.broadcast %7 : vector<8x1xf32> to vector<8x512xf32>
    %16 = arith.subf %0, %15 : vector<8x512xf32>
    %17 = vector.broadcast %14 : vector<8x1xf32> to vector<8x512xf32>
    %18 = arith.mulf %16, %17 : vector<8x512xf32>
    %c0_5 = arith.constant 0 : index
    %c0_6 = arith.constant 0 : index
    %19 = vector.load %arg2[%c0_5, %c0_6] : memref<1x512xf32, #tpu.memory_space<vmem>>, vector<1x512xf32>
    %20 = vector.broadcast %19 : vector<1x512xf32> to vector<8x512xf32>
    %21 = arith.mulf %18, %20 : vector<8x512xf32>
    %c0_7 = arith.constant 0 : index
    %c0_8 = arith.constant 0 : index
    %22 = vector.load %arg3[%c0_7, %c0_8] : memref<1x512xf32, #tpu.memory_space<vmem>>, vector<1x512xf32>
    %23 = vector.broadcast %22 : vector<1x512xf32> to vector<8x512xf32>
    %24 = arith.addf %21, %23 : vector<8x512xf32>
    %c0_9 = arith.constant 0 : index
    %c0_10 = arith.constant 0 : index
    %25 = vector.load %arg4[%c0_9, %c0_10] : memref<8x512xf32, #tpu.memory_space<vmem>>, vector<8x512xf32>
    tpu.vector_store %arg4[%c0_9, %c0_10], %24 {strides = array<i32>} : memref<8x512xf32, #tpu.memory_space<vmem>>, vector<8x512xf32>,
    return
  }
  func.func @transform_0(%arg0: i32) -> (i32, i32) {
    %c0_i32 = arith.constant 0 : i32
    %c0_i32_0 = arith.constant 0 : i32
    return %arg0, %c0_i32 : i32, i32
  }
  func.func @transform_1(%arg0: i32) -> (i32, i32) {
    %c0_i32 = arith.constant 0 : i32
    %c0_i32_0 = arith.constant 0 : i32
    %c0_i32_1 = arith.constant 0 : i32
    return %c0_i32, %c0_i32_0 : i32, i32
  }
  func.func @transform_2(%arg0: i32) -> (i32, i32) {
    %c0_i32 = arith.constant 0 : i32
    %c0_i32_0 = arith.constant 0 : i32
    %c0_i32_1 = arith.constant 0 : i32
    return %c0_i32, %c0_i32_0 : i32, i32
  }
  func.func @transform_3(%arg0: i32) -> (i32, i32) {
    %c0_i32 = arith.constant 0 : i32
    %c0_i32_0 = arith.constant 0 : i32
    return %arg0, %c0_i32 : i32, i32
  }
}

</mosaic_0001>

<bundles_post_ra>
// kernel: tpu_custom_call.1
= control target key start
LH: loop header
LB: loop body
LE: loop exit
PB: predicated region body
PF: predicated region fallthrough
CT: control target
= control target key end

     0   :  { %8 = vsyncpa [#allocation3], 0  ;;  %s291_s0 = inlined_call_operand.hbm [shape: f32[8,512], index: 0, kind: input, shape index: {}]   ;;  %s292_s1 = inlined_call_operand.hbm [shape: f32[1,512], index: 1, kind: input, shape index: {}]   ;;  %s293_s2 = inlined_call_operand.hbm [shape: f32[1,512], index: 2, kind: input, shape index: {}]   ;;  %s294_s3 = inlined_call_operand.hbm [shape: f32[8,512], index: 3, kind: output, shape index: {}]  }
   0x1   :  { %9 = vsyncpa [#allocation6], 0  ;;  %s27_s14 = sshll.u32 %s292_s1, 4  ;;  %s28_s14 = int_to_ptr.hbm [resolvable:$true] %s27_s14 }
   0x2   :  { %10 = vsyncpa [#allocation4], 0  ;;  %s255_s15 = smov [#allocation5]   ;;  %s16_s19 = sshll.u32 %s291_s0, 4  ;;  %s17_s19 = int_to_ptr.hbm [resolvable:$true] %s16_s19 }
   0x3   :  { %s29_s16 = sshll.u32 %s255_s15, 4  ;;  %s256_s20 = smov [#allocation2]   ;;  %s30_s16 = int_to_ptr.vmem [resolvable:$true] %s29_s16 }
   0x4   :  { %32 = dma.hbm_to_vmem [thread:$0]  %s28_s14, 64, %s30_s16, [#allocation6]  }
   0x5   :  { %s18_s21 = sshll.u32 %s256_s20, 4  ;;  %s38_s24 = sshll.u32 %s293_s2, 4  ;;  %s19_s21 = int_to_ptr.vmem [resolvable:$true] %s18_s21  ;;  %s39_s24 = int_to_ptr.hbm [resolvable:$true] %s38_s24 }
   0x6   :  { %21 = dma.hbm_to_vmem [thread:$0]  %s17_s19, 512, %s19_s21, [#allocation3]  }
   0x7   :  { %s257_s1 = smov [#allocation7]  }
   0x8   :  { %s40_s25 = sshll.u32 %s257_s1, 4  ;;  %s41_s25 = int_to_ptr.vmem [resolvable:$true] %s40_s25 }
   0x9   :  { %43 = dma.hbm_to_vmem [thread:$0]  %s39_s24, 64, %s41_s25, [#allocation6]  }
   0xa   :  { %249 = dma.done.wait [#allocation3], 512  }
   0xb   :  { %250 = vsyncadd [#allocation3], 4294966784 }
   0xc   :  { %251 = dma.done.wait [#allocation6], 128  }
   0xd   :  { %252 = vsyncadd [#allocation6], 4294967168  ;;  %v56_v0 = vld [vmem:[#allocation2] sm:$0xff]  ;;  %v57_v1 = vld [vmem:[#allocation2 + $0x8] sm:$0xff]  ;;  %s258_s0 = smov [#allocation8]   ;;  %s136_s28 = sshll.u32 %s294_s3, 4  ;;  %s137_s28 = int_to_ptr.hbm [resolvable:$true] %s136_s28 }
   0xe   :  { %v58_v2 = vld [vmem:[#allocation2 + $0x10] sm:$0xff]  ;;  %v60_v3 = vadd.f32 %v57_v1, %v56_v0  ;;  %v65_v4 = vmul.f32 %v56_v0, %v56_v0  ;;  %v66_v5 = vmul.f32 %v57_v1, %v57_v1  ;;  %v59_v6 = vld [vmem:[#allocation2 + $0x18] sm:$0xff]  ;;  %v97_v25 = vld [vmem:[#allocation5] sm:$0xf]  ;;  %s134_s2 = sshll.u32 %s258_s0, 4  ;;  %s135_s2 = int_to_ptr.vmem [resolvable:$true] %s134_s2 }
   0xf   :  { %v67_v8 = vmul.f32 %v58_v2, %v58_v2  ;;  %v68_v11 = vmul.f32 %v59_v6, %v59_v6  ;;  %v99_v27 = vperm.slane %v97_v25, 0  ;;  %v100_v28 = vperm.slane %v97_v25, 1  ;;  %v111_v29 = vld [vmem:[#allocation7] sm:$0xf] }
  0x10   :  { %v61_v7 = vadd.f32 %v60_v3, %v58_v2  ;;  %v69_v9 = vadd.f32 %v66_v5, %v65_v4  ;;  %v101_v31 = vperm.slane %v97_v25, 2  ;;  %v102_v32 = vperm.slane %v97_v25, 3 }
  0x11   :  { %v113_v38 = vperm.slane %v111_v29, 0  ;;  %v114_v39 = vperm.slane %v111_v29, 1  ;;  %v115_v40 = vperm.slane %v111_v29, 2  ;;  %v116_v45 = vperm.slane %v111_v29, 3 }
  0x12   :  { %v62_v10 = vadd.f32 %v61_v7, %v59_v6  ;;  %v70_v12 = vadd.f32 %v69_v9, %v67_v8 }
  0x14   :  { %63 = vadd.xlane.f32.xlu0 %v62_v10  ;;  %v71_v13 = vadd.f32 %v70_v12, %v68_v11 }
  0x1c   :  { %72 = vadd.xlane.f32.xlu0 %v71_v13 }
  0x87   :  { %v64_v14 = vpop.xlane.xlu0 %63 }
  0x88   :  { %v74_v15 = vmul.f32 0.002, %v64_v14 }
  0x8a   :  { %v76_v17 = vmul.f32 %v74_v15, %v74_v15  ;;  %v89_v33 = vsub.f32 %v56_v0, %v74_v15  ;;  %v90_v34 = vsub.f32 %v57_v1, %v74_v15  ;;  %v91_v35 = vsub.f32 %v58_v2, %v74_v15 }
  0x8b   :  { %v92_v36 = vsub.f32 %v59_v6, %v74_v15 }
  0x8f   :  { %v73_v16 = vpop.xlane.xlu0 %72 }
  0x90   :  { %v75_v18 = vmul.f32 0.002, %v73_v16 }
  0x92   :  { %v77_v19 = vsub.f32 %v75_v18, %v76_v17 }
  0x94   :  { %v78_v20 = vadd.f32 1e-05, %v77_v19 }
  0x96   :  { %151 = vrsqrt.f32 %v78_v20  ;;  %vm85_vm1 = vweird.f32 %v78_v20 }
  0x9c   :  { %v152_v21 = vpop.eup %151 }
  0x9d   :  { %v80_v22 = vmul.f32 %v152_v21, %v78_v20  ;;  %vm86_vm0 = vweird.f32 %v152_v21 }
  0x9e   :  { %vm87_vm2 = vmor %vm85_vm1, %vm86_vm0 }
  0x9f   :  { %v81_v23 = vmul.f32 %v152_v21, %v80_v22 }
  0xa1   :  { %v82_v24 = vmul.f32 0.5, %v81_v23 }
  0xa3   :  { %v83_v26 = vsub.f32 1.5, %v82_v24 }
  0xa5   :  { %v84_v30 = vmul.f32 %v152_v21, %v83_v26 }
  0xa7   :  { %v88_v37 = vsel %vm87_vm2, %v152_v21, %v84_v30 }
  0xa8   :  { %v93_v41 = vmul.f32 %v89_v33, %v88_v37  ;;  %v94_v42 = vmul.f32 %v90_v34, %v88_v37  ;;  %v95_v43 = vmul.f32 %v91_v35, %v88_v37  ;;  %v96_v44 = vmul.f32 %v92_v36, %v88_v37 }
  0xaa   :  { %v107_v46 = vmul.f32 %v99_v27, %v93_v41  ;;  %v108_v47 = vmul.f32 %v100_v28, %v94_v42  ;;  %v109_v48 = vmul.f32 %v101_v31, %v95_v43  ;;  %v110_v49 = vmul.f32 %v102_v32, %v96_v44 }
  0xac   :  { %v121_v50 = vadd.f32 %v113_v38, %v107_v46  ;;  %v122_v51 = vadd.f32 %v114_v39, %v108_v47  ;;  %v123_v52 = vadd.f32 %v115_v40, %v109_v48  ;;  %v124_v53 = vadd.f32 %v116_v45, %v110_v49 }
  0xae   :  { %125 = vst [vmem:[#allocation8] sm:$0xff] %v121_v50 }
  0xaf   :  { %126 = vst [vmem:[#allocation8 + $0x8] sm:$0xff] %v122_v51 }
  0xb0   :  { %127 = vst [vmem:[#allocation8 + $0x10] sm:$0xff] %v123_v52 }
  0xb1   :  { %128 = vst [vmem:[#allocation8 + $0x18] sm:$0xff] %v124_v53 }
  0xb2   :  { %139 = dma.vmem_to_hbm [thread:$0]  %s135_s2, 512, %s137_s28, [#allocation4]  }
  0xb3   :  { %253 = dma.done.wait [#allocation4], 512  }
  0xb4   :  { %254 = vsyncadd [#allocation4], 4294966784 }
  0xb5   :  { %144 = vsyncpa [#allocation3], 1 }
  0xb6   :  { %145 = vsyncpa [#allocation6], 1 }
  0xb7   :  { %146 = vsyncpa [#allocation4], 1 }

</bundles_post_ra>
